<compile_context>
chip_gen: v7x
topology: tpu7x:2x2x1
jax: 0.10.0
libtpu: 0.0.40
codegen_flags: <defaults>
</compile_context>

<pallas_src>
import math
import functools

import jax
import jax.numpy as jnp
from jax import lax
from jax.experimental import pallas as pl
from jax.experimental.pallas import tpu as pltpu


def block_kernel(len_ref,                                   # SMEM (B,) int32 (scalar prefetch)
                 x_ref, g1_ref, be1_ref,
                 wqkv_ref, bqkv_ref, wo_ref, bo_ref,
                 g2_ref, be2_ref, w1_ref, b1_ref, w2_ref, b2_ref,
                 o_ref, ctx_ref,
                 *, S, n_head, d_k, hdim, eps):
    b = pl.program_id(0)                                    # one batch per grid step
    x = x_ref[...].astype(jnp.float32)                      # (S, hdim)

    # ---------------- LayerNorm 1 (f32) ----------------
    mu = jnp.mean(x, axis=-1, keepdims=True)
    xc = x - mu
    var = jnp.mean(xc * xc, axis=-1, keepdims=True)
    r = xc * lax.rsqrt(var + eps) * g1_ref[...] + be1_ref[...]

    # ------- fused QKV projection: one bf16 MXU push (scale baked into Wq/bq) -------
    qkv = jnp.dot(r.astype(jnp.bfloat16), wqkv_ref[...],
                  preferred_element_type=jnp.float32) + bqkv_ref[...]
    qkv_bf = qkv.astype(jnp.bfloat16)                       # (S, 3*hdim)

    # key-length mask for this batch (block-diagonal gone: one batch per step)
    col_i = lax.broadcasted_iota(jnp.int32, (S, S), 1)
    valid = col_i < len_ref[b]

    dnums = (((1,), (1,)), ((), ()))                        # 'qd,kd->qk' — no kh.T relayout
    for h in range(n_head):                                 # static, tiny head loop
        sl = slice(h * d_k, (h + 1) * d_k)
        qh = qkv_bf[:, sl]
        kh = qkv_bf[:, hdim + h * d_k: hdim + (h + 1) * d_k]
        vh = qkv_bf[:, 2 * hdim + h * d_k: 2 * hdim + (h + 1) * d_k]
        s = lax.dot_general(qh, kh, dnums, preferred_element_type=jnp.float32)
        s = jnp.where(valid, s, -1e9)                       # masked_fill(mask == 0, -1e9)
        s = s - jnp.max(s, axis=-1, keepdims=True)
        e = jnp.exp(s)
        inv = pl.reciprocal(jnp.sum(e, axis=-1, keepdims=True), approx=True)  # EUP slot
        p = e * inv
        # TODO(synk): nn.Dropout(p=0.3) on p_attn omitted (inference semantics).
        ctx_ref[:, sl] = jnp.dot(p.astype(jnp.bfloat16), vh,
                                 preferred_element_type=jnp.float32)

    attn_out = jnp.dot(ctx_ref[...].astype(jnp.bfloat16), wo_ref[...],
                       preferred_element_type=jnp.float32) + bo_ref[...]

    # residual 1 (idrop omitted — inference)
    x = x + attn_out

    # ---------------- LayerNorm 2 (f32) ----------------
    mu2 = jnp.mean(x, axis=-1, keepdims=True)
    xc2 = x - mu2
    var2 = jnp.mean(xc2 * xc2, axis=-1, keepdims=True)
    r2 = xc2 * lax.rsqrt(var2 + eps) * g2_ref[...] + be2_ref[...]

    # ---------------- feed-forward: Linear -> ReLU -> Linear ----------------
    h1 = jnp.dot(r2.astype(jnp.bfloat16), w1_ref[...],
                 preferred_element_type=jnp.float32) + b1_ref[...]
    h1 = jnp.maximum(h1, 0.0)
    ff = jnp.dot(h1.astype(jnp.bfloat16), w2_ref[...],
                 preferred_element_type=jnp.float32) + b2_ref[...]

    # residual 2 (odrop omitted — inference)
    o_ref[...] = (x + ff).astype(o_ref.dtype)


def block_forward(x, lengths, params, n_head, eps=1e-5):
    B, S, hdim = x.shape
    ffdim = params["w1"].shape[1]
    d_k = hdim // n_head
    scale = 1.0 / math.sqrt(d_k)

    # one-time param prep: pack QKV (score scale folded into Wq/bq), stage weights bf16
    wqkv = jnp.concatenate([params["wq"] * scale, params["wk"], params["wv"]],
                           axis=1).astype(jnp.bfloat16)          # (hdim, 3*hdim)
    bqkv = jnp.concatenate([params["bq"] * scale, params["bk"], params["bv"]], axis=1)
    wo = params["wo"].astype(jnp.bfloat16)
    w1 = params["w1"].astype(jnp.bfloat16)
    w2 = params["w2"].astype(jnp.bfloat16)

    x2 = x.reshape(B * S, hdim)                             # per-batch (S, hdim) slabs

    kernel = functools.partial(block_kernel, S=S, n_head=n_head, d_k=d_k,
                               hdim=hdim, eps=eps)

    def rep(shape):
        # grid-invariant operand (weights / biases); index_map gets (b, lengths_ref)
        nd = len(shape)
        return pl.BlockSpec(shape, lambda b, _lens, _nd=nd: (0,) * _nd)

    in_specs = [
        pl.BlockSpec((S, hdim), lambda b, _lens: (b, 0)),   # x: one batch per step
        rep((1, hdim)), rep((1, hdim)),                     # LN1 gamma / beta
        rep((hdim, 3 * hdim)), rep((1, 3 * hdim)),          # packed Wqkv, bqkv
        rep((hdim, hdim)), rep((1, hdim)),                  # wo, bo
        rep((1, hdim)), rep((1, hdim)),                     # LN2 gamma / beta
        rep((hdim, ffdim)), rep((1, ffdim)),                # w1, b1
        rep((ffdim, hdim)), rep((1, hdim)),                 # w2, b2
    ]

    grid_spec = pltpu.PrefetchScalarGridSpec(
        num_scalar_prefetch=1,                              # key lengths -> SMEM
        grid=(B,),                                          # batch-parallel (2 TCs on v7x)
        in_specs=in_specs,
        out_specs=pl.BlockSpec((S, hdim), lambda b, _lens: (b, 0)),
        scratch_shapes=[pltpu.VMEM((S, hdim), jnp.float32)],  # per-head context slab
    )

    out = pl.pallas_call(
        kernel,
        out_shape=jax.ShapeDtypeStruct((B * S, hdim), x.dtype),
        grid_spec=grid_spec,
        compiler_params=pltpu.CompilerParams(dimension_semantics=("parallel",)),
    )(lengths.astype(jnp.int32), x2,
      params["g1"], params["be1"],
      wqkv, bqkv, wo, params["bo"],
      params["g2"], params["be2"],
      w1, params["b1"], w2, params["b2"])
    return out.reshape(B, S, hdim)


def reference(x, lengths, params, n_head, eps=1e-5):
    # pure-JAX f32 replica of Block.forward in eval mode (dropout = identity)
    B, S, hdim = x.shape
    d_k = hdim // n_head

    def ln(y, g, b):
        mu = jnp.mean(y, axis=-1, keepdims=True)
        var = jnp.mean((y - mu) ** 2, axis=-1, keepdims=True)
        return (y - mu) / jnp.sqrt(var + eps) * g + b

    r = ln(x, params["g1"], params["be1"])
    Q = (r @ params["wq"] + params["bq"]).reshape(B, S, n_head, d_k).transpose(0, 2, 1, 3)
    K = (r @ params["wk"] + params["bk"]).reshape(B, S, n_head, d_k).transpose(0, 2, 1, 3)
    V = (r @ params["wv"] + params["bv"]).reshape(B, S, n_head, d_k).transpose(0, 2, 1, 3)
    scores = jnp.einsum("bhqd,bhkd->bhqk", Q, K) / math.sqrt(d_k)
    m = (jnp.arange(S)[None, :] < lengths[:, None]).reshape(B, 1, 1, S)
    scores = jnp.where(m, scores, -1e9)
    p = jax.nn.softmax(scores, axis=-1)
    ctx = jnp.einsum("bhqk,bhkd->bhqd", p, V).transpose(0, 2, 1, 3).reshape(B, S, hdim)
    attn = ctx @ params["wo"] + params["bo"]
    x = x + attn
    r2 = ln(x, params["g2"], params["be2"])
    ff = jnp.maximum(r2 @ params["w1"] + params["b1"], 0.0) @ params["w2"] + params["b2"]
    return x + ff


if __name__ == "__main__":
    # Block(n_head=4, hdim=32, ffdim=64, dropout=0.3); inputs (B=2, S=8, hdim=32)
    n_head, hdim, ffdim = 4, 32, 64
    B, S = 2, 8

    key = jax.random.PRNGKey(0)
    ks = jax.random.split(key, 20)

    params = {
        "g1":  1.0 + 0.1 * jax.random.normal(ks[0], (1, hdim), jnp.float32),
        "be1": 0.1 * jax.random.normal(ks[1], (1, hdim), jnp.float32),
        "wq":  0.1 * jax.random.normal(ks[2], (hdim, hdim), jnp.float32),
        "bq":  0.1 * jax.random.normal(ks[3], (1, hdim), jnp.float32),
        "wk":  0.1 * jax.random.normal(ks[4], (hdim, hdim), jnp.float32),
        "bk":  0.1 * jax.random.normal(ks[5], (1, hdim), jnp.float32),
        "wv":  0.1 * jax.random.normal(ks[6], (hdim, hdim), jnp.float32),
        "bv":  0.1 * jax.random.normal(ks[7], (1, hdim), jnp.float32),
        "wo":  0.1 * jax.random.normal(ks[8], (hdim, hdim), jnp.float32),
        "bo":  0.1 * jax.random.normal(ks[9], (1, hdim), jnp.float32),
        "g2":  1.0 + 0.1 * jax.random.normal(ks[10], (1, hdim), jnp.float32),
        "be2": 0.1 * jax.random.normal(ks[11], (1, hdim), jnp.float32),
        "w1":  0.1 * jax.random.normal(ks[12], (hdim, ffdim), jnp.float32),
        "b1":  0.1 * jax.random.normal(ks[13], (1, ffdim), jnp.float32),
        "w2":  0.1 * jax.random.normal(ks[14], (ffdim, hdim), jnp.float32),
        "b2":  0.1 * jax.random.normal(ks[15], (1, hdim), jnp.float32),
    }

    x = jax.random.normal(ks[16], (B, S, hdim), jnp.float32)
    # variable-length key masks: batch0 keeps all 8 positions, batch1 keeps first 5
    lengths = jnp.array([8, 5], dtype=jnp.int32)

    out = block_forward(x, lengths, params, n_head)
    jax.block_until_ready(out)

    ref = reference(x, lengths, params, n_head)
    assert out.shape == (B, S, hdim)
    # tolerance accounts for bf16 MXU operands + EUP approximate reciprocal (softmax)
    assert jnp.allclose(out, ref, atol=3e-2, rtol=3e-2), "mismatch vs JAX reference"

    print("KERNEL_OK")
</pallas_src>

<mosaic_0001>
module attributes {stable_mosaic.version = 11 : i64} {
  func.func @block_kernel(%arg0: i32, %arg1: memref<2xi32, #tpu.memory_space<smem>>, %arg2: memref<8x32xf32, #tpu.memory_space<vmem>>, %arg3: memref<1x32xf32, #tpu.memory_space<vmem>>, %arg4: memref<1x32xf32, #tpu.memory_space<vmem>>, %arg5: memref<32x96xbf16, #tpu.memory_space<vmem>>, %arg6: memref<1x96xf32, #tpu.memory_space<vmem>>, %arg7: memref<32x32xbf16, #tpu.memory_space<vmem>>, %arg8: memref<1x32xf32, #tpu.memory_space<vmem>>, %arg9: memref<1x32xf32, #tpu.memory_space<vmem>>, %arg10: memref<1x32xf32, #tpu.memory_space<vmem>>, %arg11: memref<32x64xbf16, #tpu.memory_space<vmem>>, %arg12: memref<1x64xf32, #tpu.memory_space<vmem>>, %arg13: memref<64x32xbf16, #tpu.memory_space<vmem>>, %arg14: memref<1x32xf32, #tpu.memory_space<vmem>>, %arg15: memref<8x32xf32, #tpu.memory_space<vmem>>, %arg16: memref<8x32xf32, #tpu.memory_space<vmem>>) attributes {dimension_semantics = [#tpu.dimension_semantics<parallel>], iteration_bounds = array<i64: 2>, scalar_prefetch = 1 : i64, scratch_operands = 1 : i64, tpu.core_type = #tpu.core_type<tc>, window_params = [{transform_indices = @transform_0, window_bounds = array<i64: 8, 32>}, {pipeline_mode = #tpu.pipeline_mode<synchronous>, transform_indices = @transform_1, window_bounds = array<i64: 1, 32>}, {pipeline_mode = #tpu.pipeline_mode<synchronous>, transform_indices = @transform_2, window_bounds = array<i64: 1, 32>}, {pipeline_mode = #tpu.pipeline_mode<synchronous>, transform_indices = @transform_3, window_bounds = array<i64: 32, 96>}, {pipeline_mode = #tpu.pipeline_mode<synchronous>, transform_indices = @transform_4, window_bounds = array<i64: 1, 96>}, {pipeline_mode = #tpu.pipeline_mode<synchronous>, transform_indices = @transform_5, window_bounds = array<i64: 32, 32>}, {pipeline_mode = #tpu.pipeline_mode<synchronous>, transform_indices = @transform_6, window_bounds = array<i64: 1, 32>}, {pipeline_mode = #tpu.pipeline_mode<synchronous>, transform_indices = @transform_7, window_bounds = array<i64: 1, 32>}, {pipeline_mode = #tpu.pipeline_mode<synchronous>, transform_indices = @transform_8, window_bounds = array<i64: 1, 32>}, {pipeline_mode = #tpu.pipeline_mode<synchronous>, transform_indices = @transform_9, window_bounds = array<i64: 32, 64>}, {pipeline_mode = #tpu.pipeline_mode<synchronous>, transform_indices = @transform_10, window_bounds = array<i64: 1, 64>}, {pipeline_mode = #tpu.pipeline_mode<synchronous>, transform_indices = @transform_11, window_bounds = array<i64: 64, 32>}, {pipeline_mode = #tpu.pipeline_mode<synchronous>, transform_indices = @transform_12, window_bounds = array<i64: 1, 32>}, {transform_indices = @transform_13, window_bounds = array<i64: 8, 32>}]} {
    %c0 = arith.constant 0 : index
    %c0_0 = arith.constant 0 : index
    %0 = vector.load %arg2[%c0, %c0_0] : memref<8x32xf32, #tpu.memory_space<vmem>>, vector<8x32xf32>
    %cst = arith.constant dense<0.000000e+00> : vector<8xf32>
    %1 = vector.multi_reduction <add>, %0, %cst [1] : vector<8x32xf32> to vector<8xf32>
    %2 = vector.shape_cast %1 : vector<8xf32> to vector<8x1xf32>
    %cst_1 = arith.constant 3.200000e+01 : f32
    %3 = vector.broadcast %cst_1 : f32 to vector<8x1xf32>
    %4 = arith.divf %2, %3 : vector<8x1xf32>
    %5 = vector.broadcast %4 : vector<8x1xf32> to vector<8x32xf32>
    %6 = arith.subf %0, %5 : vector<8x32xf32>
    %7 = arith.mulf %6, %6 : vector<8x32xf32>
    %cst_2 = arith.constant dense<0.000000e+00> : vector<8xf32>
    %8 = vector.multi_reduction <add>, %7, %cst_2 [1] : vector<8x32xf32> to vector<8xf32>
    %9 = vector.shape_cast %8 : vector<8xf32> to vector<8x1xf32>
    %cst_3 = arith.constant 3.200000e+01 : f32
    %10 = vector.broadcast %cst_3 : f32 to vector<8x1xf32>
    %11 = arith.divf %9, %10 : vector<8x1xf32>
    %cst_4 = arith.constant 9.99999974E-6 : f32
    %12 = vector.broadcast %cst_4 : f32 to vector<8x1xf32>
    %13 = arith.addf %11, %12 : vector<8x1xf32>
    %14 = math.rsqrt %13 : vector<8x1xf32>
    %15 = vector.broadcast %14 : vector<8x1xf32> to vector<8x32xf32>
    %16 = arith.mulf %6, %15 : vector<8x32xf32>
    %c0_5 = arith.constant 0 : index
    %c0_6 = arith.constant 0 : index
    %17 = vector.load %arg3[%c0_5, %c0_6] : memref<1x32xf32, #tpu.memory_space<vmem>>, vector<1x32xf32>
    %18 = vector.broadcast %17 : vector<1x32xf32> to vector<8x32xf32>
    %19 = arith.mulf %16, %18 : vector<8x32xf32>
    %c0_7 = arith.constant 0 : index
    %c0_8 = arith.constant 0 : index
    %20 = vector.load %arg4[%c0_7, %c0_8] : memref<1x32xf32, #tpu.memory_space<vmem>>, vector<1x32xf32>
    %21 = vector.broadcast %20 : vector<1x32xf32> to vector<8x32xf32>
    %22 = arith.addf %19, %21 : vector<8x32xf32>
    %23 = arith.truncf %22 : vector<8x32xf32> to vector<8x32xbf16>
    %c0_9 = arith.constant 0 : index
    %c0_10 = arith.constant 0 : index
    %24 = vector.load %arg5[%c0_9, %c0_10] : memref<32x96xbf16, #tpu.memory_space<vmem>>, vector<32x96xbf16>
    %cst_11 = arith.constant dense<0.000000e+00> : vector<8x96xf32>
    %25 = tpu.matmul %23, %24, %cst_11 {dimension_numbers = #tpu.dot_dimension_numbers<[1], [0], [0], [1], [0, 0, 1, 1], [], []>} : vector<8x32xbf16>, vector<32x96xbf16>, vector<8x96xf32> -> vector<8x96xf32>
    %c0_12 = arith.constant 0 : index
    %c0_13 = arith.constant 0 : index
    %26 = vector.load %arg6[%c0_12, %c0_13] : memref<1x96xf32, #tpu.memory_space<vmem>>, vector<1x96xf32>
    %27 = vector.broadcast %26 : vector<1x96xf32> to vector<8x96xf32>
    %28 = arith.addf %25, %27 : vector<8x96xf32>
    %29 = arith.truncf %28 : vector<8x96xf32> to vector<8x96xbf16>
    %30 = tpu.iota {dimensions = array<i32: 1>} : vector<8x8xi32>
    %31 = arith.index_cast %arg0 : i32 to index
    %32 = memref.load %arg1[%31] : memref<2xi32, #tpu.memory_space<smem>>
    %33 = vector.broadcast %32 : i32 to vector<8x8xi32>
    %34 = arith.cmpi slt, %30, %33 : vector<8x8xi32>
    %35 = vector.extract_strided_slice %29 {offsets = [0, 0], sizes = [8, 8], strides = [1, 1]} : vector<8x96xbf16> to vector<8x8xbf16>
    %36 = vector.extract_strided_slice %29 {offsets = [0, 32], sizes = [8, 8], strides = [1, 1]} : vector<8x96xbf16> to vector<8x8xbf16>
    %37 = vector.extract_strided_slice %29 {offsets = [0, 64], sizes = [8, 8], strides = [1, 1]} : vector<8x96xbf16> to vector<8x8xbf16>
    %cst_14 = arith.constant dense<0.000000e+00> : vector<8x8xf32>
    %38 = tpu.matmul %35, %36, %cst_14 {dimension_numbers = #tpu.dot_dimension_numbers<[1], [1], [0], [0], [0, 0, 1, 0], [], []>} : vector<8x8xbf16>, vector<8x8xbf16>, vector<8x8xf32> -> vector<8x8xf32>
    %cst_15 = arith.constant -1.000000e+09 : f32
    %39 = vector.broadcast %cst_15 : f32 to vector<8x8xf32>
    %40 = arith.select %34, %38, %39 : vector<8x8xi1>, vector<8x8xf32>
    %cst_16 = arith.constant dense<0xFF800000> : vector<8xf32>
    %41 = vector.multi_reduction <maximumf>, %40, %cst_16 [1] : vector<8x8xf32> to vector<8xf32>
    %42 = vector.shape_cast %41 : vector<8xf32> to vector<8x1xf32>
    %43 = vector.broadcast %42 : vector<8x1xf32> to vector<8x8xf32>
    %44 = arith.subf %40, %43 : vector<8x8xf32>
    %45 = math.exp %44 : vector<8x8xf32>
    %cst_17 = arith.constant dense<0.000000e+00> : vector<8xf32>
    %46 = vector.multi_reduction <add>, %45, %cst_17 [1] : vector<8x8xf32> to vector<8xf32>
    %47 = vector.shape_cast %46 : vector<8xf32> to vector<8x1xf32>
    %48 = tpu.reciprocal %47 {approx = true} : vector<8x1xf32> -> vector<8x1xf32>
    %49 = vector.broadcast %48 : vector<8x1xf32> to vector<8x8xf32>
    %50 = arith.mulf %45, %49 : vector<8x8xf32>
    %51 = arith.truncf %50 : vector<8x8xf32> to vector<8x8xbf16>
    %cst_18 = arith.constant dense<0.000000e+00> : vector<8x8xf32>
    %52 = tpu.matmul %51, %37, %cst_18 {dimension_numbers = #tpu.dot_dimension_numbers<[1], [0], [0], [1], [0, 0, 1, 1], [], []>} : vector<8x8xbf16>, vector<8x8xbf16>, vector<8x8xf32> -> vector<8x8xf32>
    %c0_19 = arith.constant 0 : index
    %c0_20 = arith.constant 0 : index
    %53 = vector.load %arg16[%c0_19, %c0_20] : memref<8x32xf32, #tpu.memory_space<vmem>>, vector<8x8xf32>
    tpu.vector_store %arg16[%c0_19, %c0_20], %52 {strides = array<i32>} : memref<8x32xf32, #tpu.memory_space<vmem>>, vector<8x8xf32>,
    %54 = vector.extract_strided_slice %29 {offsets = [0, 8], sizes = [8, 8], strides = [1, 1]} : vector<8x96xbf16> to vector<8x8xbf16>
    %55 = vector.extract_strided_slice %29 {offsets = [0, 40], sizes = [8, 8], strides = [1, 1]} : vector<8x96xbf16> to vector<8x8xbf16>
    %56 = vector.extract_strided_slice %29 {offsets = [0, 72], sizes = [8, 8], strides = [1, 1]} : vector<8x96xbf16> to vector<8x8xbf16>
    %cst_21 = arith.constant dense<0.000000e+00> : vector<8x8xf32>
    %57 = tpu.matmul %54, %55, %cst_21 {dimension_numbers = #tpu.dot_dimension_numbers<[1], [1], [0], [0], [0, 0, 1, 0], [], []>} : vector<8x8xbf16>, vector<8x8xbf16>, vector<8x8xf32> -> vector<8x8xf32>
    %cst_22 = arith.constant -1.000000e+09 : f32
    %58 = vector.broadcast %cst_22 : f32 to vector<8x8xf32>
    %59 = arith.select %34, %57, %58 : vector<8x8xi1>, vector<8x8xf32>
    %cst_23 = arith.constant dense<0xFF800000> : vector<8xf32>
    %60 = vector.multi_reduction <maximumf>, %59, %cst_23 [1] : vector<8x8xf32> to vector<8xf32>
    %61 = vector.shape_cast %60 : vector<8xf32> to vector<8x1xf32>
    %62 = vector.broadcast %61 : vector<8x1xf32> to vector<8x8xf32>
    %63 = arith.subf %59, %62 : vector<8x8xf32>
    %64 = math.exp %63 : vector<8x8xf32>
    %cst_24 = arith.constant dense<0.000000e+00> : vector<8xf32>
    %65 = vector.multi_reduction <add>, %64, %cst_24 [1] : vector<8x8xf32> to vector<8xf32>
    %66 = vector.shape_cast %65 : vector<8xf32> to vector<8x1xf32>
    %67 = tpu.reciprocal %66 {approx = true} : vector<8x1xf32> -> vector<8x1xf32>
    %68 = vector.broadcast %67 : vector<8x1xf32> to vector<8x8xf32>
    %69 = arith.mulf %64, %68 : vector<8x8xf32>
    %70 = arith.truncf %69 : vector<8x8xf32> to vector<8x8xbf16>
    %cst_25 = arith.constant dense<0.000000e+00> : vector<8x8xf32>
    %71 = tpu.matmul %70, %56, %cst_25 {dimension_numbers = #tpu.dot_dimension_numbers<[1], [0], [0], [1], [0, 0, 1, 1], [], []>} : vector<8x8xbf16>, vector<8x8xbf16>, vector<8x8xf32> -> vector<8x8xf32>
    %c0_26 = arith.constant 0 : index
    %c8 = arith.constant 8 : index
    %72 = vector.load %arg16[%c0_26, %c8] : memref<8x32xf32, #tpu.memory_space<vmem>>, vector<8x8xf32>
    tpu.vector_store %arg16[%c0_26, %c8], %71 {strides = array<i32>} : memref<8x32xf32, #tpu.memory_space<vmem>>, vector<8x8xf32>,
    %73 = vector.extract_strided_slice %29 {offsets = [0, 16], sizes = [8, 8], strides = [1, 1]} : vector<8x96xbf16> to vector<8x8xbf16>
    %74 = vector.extract_strided_slice %29 {offsets = [0, 48], sizes = [8, 8], strides = [1, 1]} : vector<8x96xbf16> to vector<8x8xbf16>
    %75 = vector.extract_strided_slice %29 {offsets = [0, 80], sizes = [8, 8], strides = [1, 1]} : vector<8x96xbf16> to vector<8x8xbf16>
    %cst_27 = arith.constant dense<0.000000e+00> : vector<8x8xf32>
    %76 = tpu.matmul %73, %74, %cst_27 {dimension_numbers = #tpu.dot_dimension_numbers<[1], [1], [0], [0], [0, 0, 1, 0], [], []>} : vector<8x8xbf16>, vector<8x8xbf16>, vector<8x8xf32> -> vector<8x8xf32>
    %cst_28 = arith.constant -1.000000e+09 : f32
    %77 = vector.broadcast %cst_28 : f32 to vector<8x8xf32>
    %78 = arith.select %34, %76, %77 : vector<8x8xi1>, vector<8x8xf32>
    %cst_29 = arith.constant dense<0xFF800000> : vector<8xf32>
    %79 = vector.multi_reduction <maximumf>, %78, %cst_29 [1] : vector<8x8xf32> to vector<8xf32>
    %80 = vector.shape_cast %79 : vector<8xf32> to vector<8x1xf32>
    %81 = vector.broadcast %80 : vector<8x1xf32> to vector<8x8xf32>
    %82 = arith.subf %78, %81 : vector<8x8xf32>
    %83 = math.exp %82 : vector<8x8xf32>
    %cst_30 = arith.constant dense<0.000000e+00> : vector<8xf32>
    %84 = vector.multi_reduction <add>, %83, %cst_30 [1] : vector<8x8xf32> to vector<8xf32>
    %85 = vector.shape_cast %84 : vector<8xf32> to vector<8x1xf32>
    %86 = tpu.reciprocal %85 {approx = true} : vector<8x1xf32> -> vector<8x1xf32>
    %87 = vector.broadcast %86 : vector<8x1xf32> to vector<8x8xf32>
    %88 = arith.mulf %83, %87 : vector<8x8xf32>
    %89 = arith.truncf %88 : vector<8x8xf32> to vector<8x8xbf16>
    %cst_31 = arith.constant dense<0.000000e+00> : vector<8x8xf32>
    %90 = tpu.matmul %89, %75, %cst_31 {dimension_numbers = #tpu.dot_dimension_numbers<[1], [0], [0], [1], [0, 0, 1, 1], [], []>} : vector<8x8xbf16>, vector<8x8xbf16>, vector<8x8xf32> -> vector<8x8xf32>
    %c0_32 = arith.constant 0 : index
    %c16 = arith.constant 16 : index
    %91 = vector.load %arg16[%c0_32, %c16] : memref<8x32xf32, #tpu.memory_space<vmem>>, vector<8x8xf32>
    tpu.vector_store %arg16[%c0_32, %c16], %90 {strides = array<i32>} : memref<8x32xf32, #tpu.memory_space<vmem>>, vector<8x8xf32>,
    %92 = vector.extract_strided_slice %29 {offsets = [0, 24], sizes = [8, 8], strides = [1, 1]} : vector<8x96xbf16> to vector<8x8xbf16>
    %93 = vector.extract_strided_slice %29 {offsets = [0, 56], sizes = [8, 8], strides = [1, 1]} : vector<8x96xbf16> to vector<8x8xbf16>
    %94 = vector.extract_strided_slice %29 {offsets = [0, 88], sizes = [8, 8], strides = [1, 1]} : vector<8x96xbf16> to vector<8x8xbf16>
    %cst_33 = arith.constant dense<0.000000e+00> : vector<8x8xf32>
    %95 = tpu.matmul %92, %93, %cst_33 {dimension_numbers = #tpu.dot_dimension_numbers<[1], [1], [0], [0], [0, 0, 1, 0], [], []>} : vector<8x8xbf16>, vector<8x8xbf16>, vector<8x8xf32> -> vector<8x8xf32>
    %cst_34 = arith.constant -1.000000e+09 : f32
    %96 = vector.broadcast %cst_34 : f32 to vector<8x8xf32>
    %97 = arith.select %34, %95, %96 : vector<8x8xi1>, vector<8x8xf32>
    %cst_35 = arith.constant dense<0xFF800000> : vector<8xf32>
    %98 = vector.multi_reduction <maximumf>, %97, %cst_35 [1] : vector<8x8xf32> to vector<8xf32>
    %99 = vector.shape_cast %98 : vector<8xf32> to vector<8x1xf32>
    %100 = vector.broadcast %99 : vector<8x1xf32> to vector<8x8xf32>
    %101 = arith.subf %97, %100 : vector<8x8xf32>
    %102 = math.exp %101 : vector<8x8xf32>
    %cst_36 = arith.constant dense<0.000000e+00> : vector<8xf32>
    %103 = vector.multi_reduction <add>, %102, %cst_36 [1] : vector<8x8xf32> to vector<8xf32>
    %104 = vector.shape_cast %103 : vector<8xf32> to vector<8x1xf32>
    %105 = tpu.reciprocal %104 {approx = true} : vector<8x1xf32> -> vector<8x1xf32>
    %106 = vector.broadcast %105 : vector<8x1xf32> to vector<8x8xf32>
    %107 = arith.mulf %102, %106 : vector<8x8xf32>
    %108 = arith.truncf %107 : vector<8x8xf32> to vector<8x8xbf16>
    %cst_37 = arith.constant dense<0.000000e+00> : vector<8x8xf32>
    %109 = tpu.matmul %108, %94, %cst_37 {dimension_numbers = #tpu.dot_dimension_numbers<[1], [0], [0], [1], [0, 0, 1, 1], [], []>} : vector<8x8xbf16>, vector<8x8xbf16>, vector<8x8xf32> -> vector<8x8xf32>
    %c0_38 = arith.constant 0 : index
    %c24 = arith.constant 24 : index
    %110 = vector.load %arg16[%c0_38, %c24] : memref<8x32xf32, #tpu.memory_space<vmem>>, vector<8x8xf32>
    tpu.vector_store %arg16[%c0_38, %c24], %109 {strides = array<i32>} : memref<8x32xf32, #tpu.memory_space<vmem>>, vector<8x8xf32>,
    %c0_39 = arith.constant 0 : index
    %c0_40 = arith.constant 0 : index
    %111 = vector.load %arg16[%c0_39, %c0_40] : memref<8x32xf32, #tpu.memory_space<vmem>>, vector<8x32xf32>
    %112 = arith.truncf %111 : vector<8x32xf32> to vector<8x32xbf16>
    %c0_41 = arith.constant 0 : index
    %c0_42 = arith.constant 0 : index
    %113 = vector.load %arg7[%c0_41, %c0_42] : memref<32x32xbf16, #tpu.memory_space<vmem>>, vector<32x32xbf16>
    %cst_43 = arith.constant dense<0.000000e+00> : vector<8x32xf32>
    %114 = tpu.matmul %112, %113, %cst_43 {dimension_numbers = #tpu.dot_dimension_numbers<[1], [0], [0], [1], [0, 0, 1, 1], [], []>} : vector<8x32xbf16>, vector<32x32xbf16>, vector<8x32xf32> -> vector<8x32xf32>
    %c0_44 = arith.constant 0 : index
    %c0_45 = arith.constant 0 : index
    %115 = vector.load %arg8[%c0_44, %c0_45] : memref<1x32xf32, #tpu.memory_space<vmem>>, vector<1x32xf32>
    %116 = vector.broadcast %115 : vector<1x32xf32> to vector<8x32xf32>
    %117 = arith.addf %114, %116 : vector<8x32xf32>
    %118 = arith.addf %0, %117 : vector<8x32xf32>
    %cst_46 = arith.constant dense<0.000000e+00> : vector<8xf32>
    %119 = vector.multi_reduction <add>, %118, %cst_46 [1] : vector<8x32xf32> to vector<8xf32>
    %120 = vector.shape_cast %119 : vector<8xf32> to vector<8x1xf32>
    %cst_47 = arith.constant 3.200000e+01 : f32
    %121 = vector.broadcast %cst_47 : f32 to vector<8x1xf32>
    %122 = arith.divf %120, %121 : vector<8x1xf32>
    %123 = vector.broadcast %122 : vector<8x1xf32> to vector<8x32xf32>
    %124 = arith.subf %118, %123 : vector<8x32xf32>
    %125 = arith.mulf %124, %124 : vector<8x32xf32>
    %cst_48 = arith.constant dense<0.000000e+00> : vector<8xf32>
    %126 = vector.multi_reduction <add>, %125, %cst_48 [1] : vector<8x32xf32> to vector<8xf32>
    %127 = vector.shape_cast %126 : vector<8xf32> to vector<8x1xf32>
    %cst_49 = arith.constant 3.200000e+01 : f32
    %128 = vector.broadcast %cst_49 : f32 to vector<8x1xf32>
    %129 = arith.divf %127, %128 : vector<8x1xf32>
    %cst_50 = arith.constant 9.99999974E-6 : f32
    %130 = vector.broadcast %cst_50 : f32 to vector<8x1xf32>
    %131 = arith.addf %129, %130 : vector<8x1xf32>
    %132 = math.rsqrt %131 : vector<8x1xf32>
    %133 = vector.broadcast %132 : vector<8x1xf32> to vector<8x32xf32>
    %134 = arith.mulf %124, %133 : vector<8x32xf32>
    %c0_51 = arith.constant 0 : index
    %c0_52 = arith.constant 0 : index
    %135 = vector.load %arg9[%c0_51, %c0_52] : memref<1x32xf32, #tpu.memory_space<vmem>>, vector<1x32xf32>
    %136 = vector.broadcast %135 : vector<1x32xf32> to vector<8x32xf32>
    %137 = arith.mulf %134, %136 : vector<8x32xf32>
    %c0_53 = arith.constant 0 : index
    %c0_54 = arith.constant 0 : index
    %138 = vector.load %arg10[%c0_53, %c0_54] : memref<1x32xf32, #tpu.memory_space<vmem>>, vector<1x32xf32>
    %139 = vector.broadcast %138 : vector<1x32xf32> to vector<8x32xf32>
    %140 = arith.addf %137, %139 : vector<8x32xf32>
    %141 = arith.truncf %140 : vector<8x32xf32> to vector<8x32xbf16>
    %c0_55 = arith.constant 0 : index
    %c0_56 = arith.constant 0 : index
    %142 = vector.load %arg11[%c0_55, %c0_56] : memref<32x64xbf16, #tpu.memory_space<vmem>>, vector<32x64xbf16>
    %cst_57 = arith.constant dense<0.000000e+00> : vector<8x64xf32>
    %143 = tpu.matmul %141, %142, %cst_57 {dimension_numbers = #tpu.dot_dimension_numbers<[1], [0], [0], [1], [0, 0, 1, 1], [], []>} : vector<8x32xbf16>, vector<32x64xbf16>, vector<8x64xf32> -> vector<8x64xf32>
    %c0_58 = arith.constant 0 : index
    %c0_59 = arith.constant 0 : index
    %144 = vector.load %arg12[%c0_58, %c0_59] : memref<1x64xf32, #tpu.memory_space<vmem>>, vector<1x64xf32>
    %145 = vector.broadcast %144 : vector<1x64xf32> to vector<8x64xf32>
    %146 = arith.addf %143, %145 : vector<8x64xf32>
    %cst_60 = arith.constant 0.000000e+00 : f32
    %147 = vector.broadcast %cst_60 : f32 to vector<8x64xf32>
    %148 = arith.maximumf %146, %147 : vector<8x64xf32>
    %149 = arith.truncf %148 : vector<8x64xf32> to vector<8x64xbf16>
    %c0_61 = arith.constant 0 : index
    %c0_62 = arith.constant 0 : index
    %150 = vector.load %arg13[%c0_61, %c0_62] : memref<64x32xbf16, #tpu.memory_space<vmem>>, vector<64x32xbf16>
    %cst_63 = arith.constant dense<0.000000e+00> : vector<8x32xf32>
    %151 = tpu.matmul %149, %150, %cst_63 {dimension_numbers = #tpu.dot_dimension_numbers<[1], [0], [0], [1], [0, 0, 1, 1], [], []>} : vector<8x64xbf16>, vector<64x32xbf16>, vector<8x32xf32> -> vector<8x32xf32>
    %c0_64 = arith.constant 0 : index
    %c0_65 = arith.constant 0 : index
    %152 = vector.load %arg14[%c0_64, %c0_65] : memref<1x32xf32, #tpu.memory_space<vmem>>, vector<1x32xf32>
    %153 = vector.broadcast %152 : vector<1x32xf32> to vector<8x32xf32>
    %154 = arith.addf %151, %153 : vector<8x32xf32>
    %155 = arith.addf %118, %154 : vector<8x32xf32>
    %c0_66 = arith.constant 0 : index
    %c0_67 = arith.constant 0 : index
    %156 = vector.load %arg15[%c0_66, %c0_67] : memref<8x32xf32, #tpu.memory_space<vmem>>, vector<8x32xf32>
    tpu.vector_store %arg15[%c0_66, %c0_67], %155 {strides = array<i32>} : memref<8x32xf32, #tpu.memory_space<vmem>>, vector<8x32xf32>,
    return
  }
  func.func @transform_0(%arg0: i32, %arg1: memref<2xi32, #tpu.memory_space<smem>>) -> (i32, i32) {
    %c0_i32 = arith.constant 0 : i32
    %c0_i32_0 = arith.constant 0 : i32
    return %arg0, %c0_i32 : i32, i32
  }
  func.func @transform_1(%arg0: i32, %arg1: memref<2xi32, #tpu.memory_space<smem>>) -> (i32, i32) {
    %c0_i32 = arith.constant 0 : i32
    %c0_i32_0 = arith.constant 0 : i32
    %c0_i32_1 = arith.constant 0 : i32
    return %c0_i32, %c0_i32_0 : i32, i32
  }
  func.func @transform_2(%arg0: i32, %arg1: memref<2xi32, #tpu.memory_space<smem>>) -> (i32, i32) {
    %c0_i32 = arith.constant 0 : i32
    %c0_i32_0 = arith.constant 0 : i32
    %c0_i32_1 = arith.constant 0 : i32
    return %c0_i32, %c0_i32_0 : i32, i32
  }
  func.func @transform_3(%arg0: i32, %arg1: memref<2xi32, #tpu.memory_space<smem>>) -> (i32, i32) {
    %c0_i32 = arith.constant 0 : i32
    %c0_i32_0 = arith.constant 0 : i32
    %c0_i32_1 = arith.constant 0 : i32
    return %c0_i32, %c0_i32_0 : i32, i32
  }
  func.func @transform_4(%arg0: i32, %arg1: memref<2xi32, #tpu.memory_space<smem>>) -> (i32, i32) {
    %c0_i32 = arith.constant 0 : i32
    %c0_i32_0 = arith.constant 0 : i32
    %c0_i32_1 = arith.constant 0 : i32
    return %c0_i32, %c0_i32_0 : i32, i32
  }
  func.func @transform_5(%arg0: i32, %arg1: memref<2xi32, #tpu.memory_space<smem>>) -> (i32, i32) {
    %c0_i32 = arith.constant 0 : i32
    %c0_i32_0 = arith.constant 0 : i32
    %c0_i32_1 = arith.constant 0 : i32
    return %c0_i32, %c0_i32_0 : i32, i32
  }
  func.func @transform_6(%arg0: i32, %arg1: memref<2xi32, #tpu.memory_space<smem>>) -> (i32, i32) {
    %c0_i32 = arith.constant 0 : i32
    %c0_i32_0 = arith.constant 0 : i32
    %c0_i32_1 = arith.constant 0 : i32
    return %c0_i32, %c0_i32_0 : i32, i32
  }
  func.func @transform_7(%arg0: i32, %arg1: memref<2xi32, #tpu.memory_space<smem>>) -> (i32, i32) {
    %c0_i32 = arith.constant 0 : i32
    %c0_i32_0 = arith.constant 0 : i32
    %c0_i32_1 = arith.constant 0 : i32
    return %c0_i32, %c0_i32_0 : i32, i32
  }
  func.func @transform_8(%arg0: i32, %arg1: memref<2xi32, #tpu.memory_space<smem>>) -> (i32, i32) {
    %c0_i32 = arith.constant 0 : i32
    %c0_i32_0 = arith.constant 0 : i32
    %c0_i32_1 = arith.constant 0 : i32
    return %c0_i32, %c0_i32_0 : i32, i32
  }
  func.func @transform_9(%arg0: i32, %arg1: memref<2xi32, #tpu.memory_space<smem>>) -> (i32, i32) {
    %c0_i32 = arith.constant 0 : i32
    %c0_i32_0 = arith.constant 0 : i32
    %c0_i32_1 = arith.constant 0 : i32
    return %c0_i32, %c0_i32_0 : i32, i32
  }
  func.func @transform_10(%arg0: i32, %arg1: memref<2xi32, #tpu.memory_space<smem>>) -> (i32, i32) {
    %c0_i32 = arith.constant 0 : i32
    %c0_i32_0 = arith.constant 0 : i32
    %c0_i32_1 = arith.constant 0 : i32
    return %c0_i32, %c0_i32_0 : i32, i32
  }
  func.func @transform_11(%arg0: i32, %arg1: memref<2xi32, #tpu.memory_space<smem>>) -> (i32, i32) {
    %c0_i32 = arith.constant 0 : i32
    %c0_i32_0 = arith.constant 0 : i32
    %c0_i32_1 = arith.constant 0 : i32
    return %c0_i32, %c0_i32_0 : i32, i32
  }
  func.func @transform_12(%arg0: i32, %arg1: memref<2xi32, #tpu.memory_space<smem>>) -> (i32, i32) {
    %c0_i32 = arith.constant 0 : i32
    %c0_i32_0 = arith.constant 0 : i32
    %c0_i32_1 = arith.constant 0 : i32
    return %c0_i32, %c0_i32_0 : i32, i32
  }
  func.func @transform_13(%arg0: i32, %arg1: memref<2xi32, #tpu.memory_space<smem>>) -> (i32, i32) {
    %c0_i32 = arith.constant 0 : i32
    %c0_i32_0 = arith.constant 0 : i32
    return %arg0, %c0_i32 : i32, i32
  }
}

</mosaic_0001>

<bundles_post_ra>
// kernel: tpu_custom_call.1
= control target key start
LH: loop header
LB: loop body
LE: loop exit
PB: predicated region body
PF: predicated region fallthrough
CT: control target
= control target key end

     0   :  { %s2396_s0 = inlined_call_operand.hbm [shape: s32[2], index: 0, kind: input, shape index: {}]   ;;  %s2397_s1 = inlined_call_operand.vmem [shape: f32[16,32], index: 1, kind: input, shape index: {}]   ;;  %s2398_s2 = inlined_call_operand.vmem [shape: f32[1,32], index: 2, kind: input, shape index: {}]   ;;  %s2399_s3 = inlined_call_operand.vmem [shape: f32[1,32], index: 3, kind: input, shape index: {}]   ;;  %s2400_s4 = inlined_call_operand.vmem [shape: bf16[32,96], index: 4, kind: input, shape index: {}]   ;;  %s2401_s5 = inlined_call_operand.hbm [shape: f32[1,96], index: 5, kind: input, shape index: {}]   ;;  %s2402_s6 = inlined_call_operand.vmem [shape: bf16[32,32], index: 6, kind: input, shape index: {}]   ;;  %s2403_s7 = inlined_call_operand.hbm [shape: f32[1,32], index: 7, kind: input, shape index: {}]   ;;  %s2404_s8 = inlined_call_operand.hbm [shape: f32[1,32], index: 8, kind: input, shape index: {}]   ;;  %s2405_s9 = inlined_call_operand.hbm [shape: f32[1,32], index: 9, kind: input, shape index: {}]   ;;  %s2406_s10 = inlined_call_operand.vmem [shape: bf16[32,64], index: 10, kind: input, shape index: {}]   ;;  %s2407_s11 = inlined_call_operand.vmem [shape: f32[1,64], index: 11, kind: input, shape index: {}]   ;;  %s2408_s12 = inlined_call_operand.vmem [shape: bf16[64,32], index: 12, kind: input, shape index: {}]   ;;  %s2409_s13 = inlined_call_operand.vmem [shape: f32[1,32], index: 13, kind: input, shape index: {}]   ;;  %s2410_s14 = inlined_call_operand.hbm [shape: f32[16,32], index: 14, kind: output, shape index: {}]  }
   0x1   :  { %2421 = sst [smem:[#allocation25_spill]] %s2410_s14  ;;  %s1717_s15 = scalar_lea.hbm %s2396_s0, 16 }
   0x2   :  { %p1718_p0 = scmp.ne.s32.totalorder %s2396_s0, %s1717_s15  ;;  %p1721_p1 = scmp.lt.u32.totalorder %s1717_s15, %s2396_s0 }
   0x4   :  { %p1723_p2 = pnand %p1721_p1, %p1718_p0 }
   0x6   :  { %1726 = shalt.err (!%p1723_p2)  }
   0x7   :  { %s1917_s20 = smov [#allocation4]  }
   0x8   :  { %20 = dma.hbm_to_smem %s2396_s0, 16, %s1917_s20, [#allocation3] }
   0x9   :  { %1883 = dma.done.wait [#allocation3], 16 }
   0xa   :  { %1884 = vsyncadd [#allocation3], 4294967280 }
   0xb   :  { %22 = sfence }
   0xc   :  { %23 = vsyncpa [#allocation6], 0 }
   0xd   :  { %24 = vsyncpa [#allocation9], 0 }
   0xe   :  { %25 = vsyncpa [#allocation12], 0 }
   0xf   :  { %26 = vsyncpa [#allocation7], 0 }
  0x10   :  { %28 = vsyncpa [#allocation7 + $0x1], 0  ;;  %s2026_s23 = smov 0   ;;  %s2028_s24 = smov 0  }
  0x11   :  { %s2030_s25 = smov 0   ;;  %s2032_s26 = smov 0  }
  0x12 LB: > { %2422 = sst [smem:[#allocation19_spill]] %s1903_s23  ;;  %s2047_s0 = sadd.s32 4294967295, %s1915_s26   ;;  %s1915_s26 = sphi %s2032_s26, %s2448_s26   ;;  %s1911_s25 = sphi %s2030_s25, %s2450_s25   ;;  %s1907_s24 = sphi %s2028_s24, %s2452_s24   ;;  %s1903_s23 = sphi %s2026_s23, %s2451_s23  }
  0x13   : > { %2423 = sst [smem:[#allocation20_spill]] %s1911_s25  ;;  %s1428_s27 = sadd.s32 4294967294, %s1915_s26  }
  0x14   : > { %2424 = sst [smem:[#allocation21_spill]] %s1915_s26  ;;  %s2051_s28 = sadd.s32 1, %s1915_s26  }
  0x15   : > { %2425 = sst [smem:[#allocation22_spill]] %s2051_s28  ;;  %s319_s29 = sadd.s32 1, %s1911_s25 }
  0x16   : > { %s316_s30 = ssub.s32 %s1915_s26, %s2051_s28  ;;  %p329_p3 = scmp.ne.s32.totalorder %s1911_s25, %s1907_s24 }
  0x17   : > { %p317_p4 = scmp.eq.s32.totalorder %s316_s30, 0  ;;  %p330_p5 = scmp.eq.s32.totalorder %s2047_s0, 1 }
  0x18   : > { %p335_p6 = scmp.ne.s32.totalorder %s1907_s24, %s1903_s23  ;;  %p336_p7 = scmp.eq.s32.totalorder %s1428_s27, 1 }
  0x19   : > { %s2062_s15 = scalar_select %p317_p4, %s1911_s25, %s319_s29  }
  0x1a   : > { %p2064_p8 = por %p330_p5, %p329_p3  ;;  %p2068_p9 = por %p336_p7, %p335_p6 }
  0x1b   : > { %2426 = sst [smem:[#allocation23_spill]] %s2062_s15  ;;  %p1429_p10 = scmp.ge.s32.totalorder %s1915_s26, 1 }
  0x1c   : > { %s2427_s16 = scalar_select %p2064_p8, 1, 0 }
  0x1d   : > { %s2428_s17 = scalar_select %p2068_p9, 1, 0 }
  0x1e   : > { %p343_p11 = scmp.lt.s32.totalorder %s1915_s26, 3  ;;  %p2416_p12 = scmp.eq.s32.totalorder %s2047_s0, 0 }
  0x1f   : > { %2429 = sst [smem:[#allocation24_spill]] %s2428_s17  ;;  %s1918_s19 = smov [#allocation8]  }
  0x20   : > { %p2075_p13 = pnand %p1429_p10, %p343_p11  ;;  %s379_s20 = sshll.u32 %s1918_s19, 4  ;;  %s380_s20 = int_to_ptr.vmem [resolvable:$true] %s379_s20 }
  0x21   : > { %s1919_s21 = smov [#allocation5]   ;;  %s1920_s29 = smov [#allocation10]  }
  0x22   : > { %s2430_s18 = scalar_select %p2075_p13, 1, 0 }
  0x23   : > { %p1608_p0 = pneg %p2075_p13  ;;  %s365_s22 = sshll.u32 %s1919_s21, 4  ;;  %s2087_s22 = int_to_ptr.vmem [resolvable:$true] %s365_s22 }
  0x24   : > { %s390_s30 = sshll.u32 %s1920_s29, 4  ;;  %s1727_s19 = scalar_lea.hbm %s2403_s7, 16  ;;  %s2089_s30 = int_to_ptr.vmem [resolvable:$true] %s390_s30 }
  0x25   : > { %p2083_p1 = pnand %p2416_p12, %p1608_p0  ;;  %p1728_p2 = scmp.ne.s32.totalorder %s2403_s7, %s1727_s19 }
  0x26   : > { %p1734_p6 = scmp.lt.u32.totalorder %s1727_s19, %s2403_s7 }
  0x27   : > { %p2099_p3 = pneg %p2083_p1 }
  0x29   : > { %p1730_p4 = pnand %p2099_p3, %p1728_p2 }
  0x2b   : > { %p1731_p5 = pneg %p1730_p4 }
  0x2d   : > { %p1736_p7 = pnand %p1734_p6, %p1731_p5 }
  0x2f   : > { %1739 = shalt.err (!%p1736_p7)
}
  0x30   : > { %s1740_s25 = scalar_lea.vmem %s380_s20, 16  ;;  %s1747_s28 = scalar_lea.vmem %s380_s20, 32 }
  0x31   : > { %p1741_p10 = scmp.ne.s32.totalorder %s380_s20, %s1740_s25  ;;  %p1748_p12 = scmp.lt.s32.totalorder %s380_s20, %s380_s20 }
  0x32   : > { %p1749_p9 = scmp.lt.s32.totalorder %s1747_s28, %s1740_s25 }
  0x33   : > { %p1743_p11 = pnand %p1741_p10, %p2099_p3 }
  0x34   : > { %p1750_p8 = por %p1749_p9, %p1748_p12 }
  0x35   : > { %p1744_p0 = pneg %p1743_p11 }
  0x37   : > { %p1751_p13 = pnand %p1750_p8, %p1744_p0 }
  0x39   : > { %1754 = shalt.err (!%p1751_p13)
}
  0x3a   : > { %1614 = dma.hbm_to_vmem [thread:$0]  (!%p2083_p1), %s2403_s7, 16, %s380_s20, [#allocation9]  }
  0x3b   : > { %s1755_s29 = scalar_lea.hbm %s2401_s5, 16 }
  0x3c   : > { %p1756_p2 = scmp.ne.s32.totalorder %s2401_s5, %s1755_s29  ;;  %p1762_p8 = scmp.lt.u32.totalorder %s1755_s29, %s2401_s5 }
  0x3e   : > { %p1758_p4 = pnand %p1756_p2, %p2099_p3 }
  0x40   : > { %p1759_p9 = pneg %p1758_p4 }
  0x42   : > { %p1764_p12 = pnand %p1762_p8, %p1759_p9 }
  0x44   : > { %1767 = shalt.err (!%p1764_p12)
}
  0x45   : > { %s1768_s20 = scalar_lea.vmem %s2087_s22, 16  ;;  %s1775_s14 = scalar_lea.vmem %s2087_s22, 32 }
  0x46   : > { %p1769_p13 = scmp.ne.s32.totalorder %s2087_s22, %s1768_s20  ;;  %p1776_p7 = scmp.lt.s32.totalorder %s2087_s22, %s2087_s22 }
  0x47   : > { %p1777_p10 = scmp.lt.s32.totalorder %s1775_s14, %s1768_s20 }
  0x48   : > { %p1771_p5 = pnand %p1769_p13, %p2099_p3 }
  0x49   : > { %p1778_p11 = por %p1777_p10, %p1776_p7 }
  0x4a   : > { %p1772_p6 = pneg %p1771_p5 }
  0x4c   : > { %p1779_p0 = pnand %p1778_p11, %p1772_p6 }
  0x4e   : > { %1782 = shalt.err (!%p1779_p0)
}
  0x4f   : > { %1611 = dma.hbm_to_vmem [thread:$0]  (!%p2083_p1), %s2401_s5, 16, %s2087_s22, [#allocation6]  }
  0x50   : > { %s1783_s19 = scalar_lea.hbm %s2404_s8, 16 }
  0x51   : > { %p1784_p2 = scmp.ne.s32.totalorder %s2404_s8, %s1783_s19  ;;  %p1790_p8 = scmp.lt.u32.totalorder %s1783_s19, %s2404_s8 }
  0x53   : > { %p1786_p4 = pnand %p1784_p2, %p2099_p3 }
  0x55   : > { %p1787_p9 = pneg %p1786_p4 }
  0x57   : > { %p1792_p12 = pnand %p1790_p8, %p1787_p9 }
  0x59   : > { %1795 = shalt.err (!%p1792_p12)
}
  0x5a   : > { %s1796_s22 = scalar_lea.vmem %s2089_s30, 16  ;;  %s1803_s14 = scalar_lea.vmem %s2089_s30, 32 }
  0x5b   : > { %p1797_p13 = scmp.ne.s32.totalorder %s2089_s30, %s1796_s22  ;;  %p1804_p7 = scmp.lt.s32.totalorder %s2089_s30, %s2089_s30 }
  0x5c   : > { %p1805_p10 = scmp.lt.s32.totalorder %s1803_s14, %s1796_s22 }
  0x5d   : > { %p1799_p5 = pnand %p1797_p13, %p2099_p3 }
  0x5e   : > { %p1806_p11 = por %p1805_p10, %p1804_p7 }
  0x5f   : > { %p1800_p6 = pneg %p1799_p5 }
  0x61   : > { %p1807_p0 = pnand %p1806_p11, %p1800_p6 }
  0x63   : > { %1810 = shalt.err (!%p1807_p0)
}
  0x64   : > { %1617 = dma.hbm_to_vmem [thread:$0]  (!%p2083_p1), %s2404_s8, 16, %s2089_s30, [#allocation9]  }
  0x65   : > { %s1921_s17 = smov [#allocation11]   ;;  %s1811_s25 = scalar_lea.hbm %s2405_s9, 16 }
  0x66   : > { %s401_s23 = sshll.u32 %s1921_s17, 4  ;;  %p1812_p2 = scmp.ne.s32.totalorder %s2405_s9, %s1811_s25  ;;  %s402_s23 = int_to_ptr.vmem [resolvable:$true] %s401_s23 }
  0x67   : > { %p1818_p8 = scmp.lt.u32.totalorder %s1811_s25, %s2405_s9 }
  0x68   : > { %p1814_p4 = pnand %p1812_p2, %p2099_p3 }
  0x6a   : > { %p1815_p9 = pneg %p1814_p4 }
  0x6c   : > { %p1820_p12 = pnand %p1818_p8, %p1815_p9 }
  0x6e   : > { %1823 = shalt.err (!%p1820_p12)
}
  0x6f   : > { %s1824_s30 = scalar_lea.vmem %s402_s23, 16  ;;  %s1831_s26 = scalar_lea.vmem %s402_s23, 32 }
  0x70   : > { %p1825_p13 = scmp.ne.s32.totalorder %s402_s23, %s1824_s30  ;;  %p1832_p7 = scmp.lt.s32.totalorder %s402_s23, %s402_s23 }
  0x71   : > { %p1833_p10 = scmp.lt.s32.totalorder %s1831_s26, %s1824_s30 }
  0x72   : > { %p1827_p5 = pnand %p1825_p13, %p2099_p3 }
  0x73   : > { %p1834_p11 = por %p1833_p10, %p1832_p7 }
  0x74   : > { %p1828_p6 = pneg %p1827_p5 }
  0x76   : > { %p1835_p0 = pnand %p1834_p11, %p1828_p6 }
  0x78   : > { %1838 = shalt.err (!%p1835_p0)
}
  0x79   : > { %1620 = dma.hbm_to_vmem [thread:$0]  (!%p2083_p1), %s2405_s9, 16, %s402_s23, [#allocation12]  }
  0x7a   : > { %p2433_p2 = scmp.ne.s32.totalorder %s2430_s18, 0 }
  0x7b   : > { %p2434_p4 = scmp.eq.s32.totalorder (!%p2433_p2), %s2047_s0, 0 }
  0x7c   : > { %433 = sbr.rel (%p2433_p2) target bundleno = 2706 (0xa92), region = 72 }
  0x83   : > { %1886 = dma.done.wait (%p2434_p4), [#allocation6], 16   ;;  %p2435_p3 = pmov %p2434_p4 }
  0x85   : > { %1888 = vsyncadd (%p2435_p3), [#allocation6], 4294967280  ;;  %p2436_p9 = pmov %p2435_p3 }
  0x86   : > { %p2437_p8 = pmov %p2435_p3 }
  0x87   : > { %1890 = dma.done.wait (%p2436_p9), [#allocation9], 32  }
  0x88   : > { %1892 = vsyncadd (%p2437_p8), [#allocation9], 4294967264  ;;  %p2438_p12 = pmov %p2435_p3 }
  0x89   : > { %p2439_p1 = pmov %p2435_p3 }
  0x8a   : > { %1894 = dma.done.wait (%p2438_p12), [#allocation12], 16  }
  0x8b   : > { %1896 = vsyncadd (%p2439_p1), [#allocation12], 4294967280  ;;  %p488_p13 = scmp.lt.s32.totalorder %s2047_s0, 1  ;;  %vm494_vm0 = vcmask 261120   ;;  %v1687_v7 = vld [vmem:[%s2400_s4] sm:$0xff]   ;;  %v1922_v8 = vmov 0.0   ;;  %v593_v38 = vlaneseq }
  0x8c   : > { %1506 = vmatprep.subr.bf16.mxu0 %v1922_v8  ;;  %vm1923_vm1 = vmmov 0   ;;  %v1688_v9 = vld [vmem:[%s2400_s4 + $0x8] sm:$0xff]   ;;  %1514 = vmatprep.subr.bf16.mxu1 %v1922_v8  ;;  %v1442_v14 = vld [vmem:[%s2398_s2] ss:$0 sm:$0xff]  ;;  %s1924_s15 = smov 120   ;;  %s1925_s17 = smov 96  }
  0x8d   : > { %s489_s18 = scalar_select %p488_p13, %s2047_s0, 1  ;;  %1510 = vmatprep.mubr.msk.bf16.mxu0 %vm1923_vm1, %v1922_v8  ;;  %1507 = vmatpush3.bf16.msra.mxu0 %v1687_v7  ;;  %v1443_v16 = vld [vmem:[%s2399_s3] ss:$0 sm:$0xff]  ;;  %v1444_v20 = vld [vmem:[#allocation5] ss:$0 sm:$0xff]  ;;  %vm601_vm2 = vcmask 64512  }
  0x8e   : > { %1508 = vmatprep.subr.bf16.mxu0 %v1922_v8  ;;  %1516 = vmatprep.mubr.msk.bf16.mxu1 %vm1923_vm1, %v1922_v8  ;;  %s1928_s21 = smov 112   ;;  %s1929_s23 = smov 72   ;;  %v594_v39 = vand.u32 127, %v593_v38  ;;  %vm666_vm4 = vcmask 1043456   ;;  %vm826_vm5 = vcmask 130112   ;;  %vm943_vm6 = vcmask 195712  }
  0x8f   : > { %s1441_s27 = sshll.u32 %s489_s18, 3  ;;  %s1926_s18 = smov 88   ;;  %vm1060_vm7 = vcmask 261312   ;;  %vm1268_vm8 = vcmask 523264  }
  0x90   : > { %s491_s19 = scalar_lea.vmem %s2397_s1, %s1441_s27  ;;  %s1927_s27 = smov 80  }
  0x91   : > { %v2200_v0 = vld [vmem:[%s491_s19] sm:$0xff]  ;;  %1509 = vmatpush3.bf16.msra.mxu0 %v1688_v9  ;;  %s1930_s19 = smov 104   ;;  %s595_s29 = sld [smem:[#allocation4 + %s2047_s0]] }
  0x92   : > { %v495_v1 = vsel %vm494_vm0, %v2200_v0, 0.0  ;;  %1520 = vmatprep.subr.bf16.mxu0 %v1922_v8  ;;  %s1931_s25 = smov 64   ;;  %s1932_s28 = smov 56  }
  0x93   : > { %496 = vadd.xlane.f32.xlu0 %v495_v1  ;;  %s1933_s20 = smov 48   ;;  %s1934_s22 = smov 40  }
  0x94   : > { %s1935_s14 = smov 8   ;;  %p2443_p6 = scmp.ne.s32.totalorder %s2427_s16, 0 }
  0x97   : > { %v596_v40 = vstv %s595_s29  ;;  %s1473_s29 = sshll.u32 %s2047_s0, 7 }
  0x98   : > { %vm2260_vm3 = vcmp.lt.s32.totalorder %v594_v39, %v596_v40 }
 0x120   : > { %v497_v2 = vpop.xlane.xlu0 %496 }
 0x121   : > { %v499_v3 = vmul.f32 0.03125, %v497_v2 }
 0x123   : > { %v500_v4 = vsub.f32 %v2200_v0, %v499_v3 }
 0x125   : > { %v501_v5 = vmul.f32 %v500_v4, %v500_v4 }
 0x127   : > { %v502_v6 = vsel %vm494_vm0, %v501_v5, 0.0 }
 0x128   : > { %503 = vadd.xlane.f32.xlu0 %v502_v6 }
 0x1b5   : > { %v504_v10 = vpop.xlane.xlu0 %503 }
 0x1b6   : > { %v505_v11 = vmul.f32 0.03125, %v504_v10 }
 0x1b8   : > { %v506_v12 = vadd.f32 1e-05, %v505_v11 }
 0x1ba   : > { %1697 = vrsqrt.f32 %v506_v12 }
 0x1c4   : > { %v1698_v13 = vpop.eup %1697 }
 0x1c5   : > { %v508_v15 = vmul.f32 %v1698_v13, %v500_v4 }
 0x1c7   : > { %v516_v17 = vmul.f32 %v1442_v14, %v508_v15 }
 0x1c9   : > { %v524_v18 = vadd.f32 %v1443_v16, %v516_v17 }
 0x1cb   : > { %v525_v19 = vpack.c.bf16 %v524_v18, %v524_v18 }
 0x1cd   : > { %1511 = vmatmul.mubr.msk.bf16.vlgmr.msra.gmra.mrb[0].mxu0 %vm494_vm0, %v525_v19 }
 0x1ce   : > { %1522 = vmatprep.mubr.msk.bf16.mxu0 %vm1923_vm1, %v1922_v8 }
 0x2a0   : > { %v586_v21 = vpop.f32.mrb[0].mxu0 }
 0x2a1   : > { %v587_v22 = vadd.f32 %v1444_v20, %v586_v21  ;;  %v1512_v23 = vpop.f32.mrb[1].mxu0 }
 0x2a2   : > { %v589_v24 = vpop.f32.mrb[2].mxu0 }
 0x2a3   : > { %v2229_v25 = vpack.c.bf16 %v587_v22, %v587_v22  ;;  %v1513_v26 = vpop.f32.mrb[3].mxu0 }
 0x2a5   : > { %711 = vrot.lane.b32.xlu0 %v2229_v25, %s1924_s15  ;;  %599 = vrot.lane.b32.xlu1 %v2229_v25, %s1925_s17  ;;  %s1938_s15 = smov [#allocation13]  }
 0x2a6   : > { %s1843_s17 = sshll.u32 %s1938_s15, 4  ;;  %s1844_s17 = int_to_ptr.vmem [resolvable:$false] %s1843_s17 }
 0x2a9   : > { %713 = vrot.lane.b32.xlu1 %v2229_v25, %s1926_s18  ;;  %s1936_s18 = smov 16  }
 0x2ad   : > { %830 = vrot.lane.b32.xlu1 %v2229_v25, %s1927_s27  ;;  %s1937_s27 = smov 24  }
 0x2b1   : > { %828 = vrot.lane.b32.xlu1 %v2229_v25, %s1928_s21 }
 0x2b5   : > { %947 = vrot.lane.b32.xlu1 %v2229_v25, %s1929_s23 }
 0x2b9   : > { %945 = vrot.lane.b32.xlu1 %v2229_v25, %s1930_s19 }
 0x317   : > { %v600_v27 = vpop.permute.xlu1 %599  ;;  %v712_v32 = vpop.permute.xlu0 %711 }
 0x318   : > { %v606_v28 = vsel %vm601_vm2, %v600_v27, 0 }
 0x319   : > { %1515 = vmatpush3.bf16.xpose.msra.mxu1 %v606_v28 }
 0x31a   : > { %1526 = vmatprep.subr.bf16.mxu1 %v1922_v8 }
 0x31b   : > { %v714_v29 = vpop.permute.xlu1 %713 }
 0x31c   : > { %v719_v30 = vsel %vm601_vm2, %v714_v29, 0 }
 0x31f   : > { %v831_v31 = vpop.permute.xlu1 %830 }
 0x320   : > { %1517 = vmatmul.mubr.msk.bf16.vlgmr.msra.gmra.mrb[0].mxu1 %vm601_vm2, %v2229_v25  ;;  %v836_v34 = vsel %vm601_vm2, %v831_v31, 0 }
 0x321   : > { %1527 = vmatpush3.bf16.xpose.msra.mxu1 %v719_v30  ;;  %1528 = vmatprep.mubr.msk.bf16.mxu1 %vm1923_vm1, %v1922_v8 }
 0x322   : > { %1538 = vmatprep.subr.bf16.mxu1 %v1922_v8 }
 0x323   : > { %v829_v33 = vpop.permute.xlu1 %828 }
 0x327   : > { %v948_v35 = vpop.permute.xlu1 %947 }
 0x328   : > { %1529 = vmatmul.mubr.msk.bf16.vlgmr.msra.gmra.mrb[4].mxu1 %vm601_vm2, %v712_v32  ;;  %v953_v36 = vsel %vm601_vm2, %v948_v35, 0 }
 0x329   : > { %1539 = vmatpush3.bf16.xpose.msra.mxu1 %v836_v34  ;;  %1540 = vmatprep.mubr.msk.bf16.mxu1 %vm1923_vm1, %v1922_v8 }
 0x32a   : > { %1550 = vmatprep.subr.bf16.mxu1 %v1922_v8 }
 0x32b   : > { %v946_v37 = vpop.permute.xlu1 %945 }
 0x330   : > { %1541 = vmatmul.mubr.msk.bf16.vlgmr.msra.gmra.mrb[8].mxu1 %vm601_vm2, %v829_v33 }
 0x331   : > { %1551 = vmatpush3.bf16.xpose.msra.mxu1 %v953_v36  ;;  %1552 = vmatprep.mubr.msk.bf16.mxu1 %vm1923_vm1, %v1922_v8 }
 0x332   : > { %1562 = vmatprep.subr.bf16.mxu1 %v1922_v8 }
 0x338   : > { %1553 = vmatmul.mubr.msk.bf16.vlgmr.msra.gmra.mrb[12].mxu1 %vm601_vm2, %v946_v37 }
 0x339   : > { %1566 = vmatprep.mubr.msk.bf16.mxu1 %vm1923_vm1, %v1922_v8 }
 0x3f3   : > { %v642_v42 = vpop.f32.mrb[0].mxu1 }
 0x3f4   : > { %v648_v43 = vsel %vm2260_vm3, %v642_v42, -1e+09  ;;  %v1518_v44 = vpop.f32.mrb[1].mxu1 }
 0x3f5   : > { %v645_v45 = vpop.f32.mrb[2].mxu1  ;;  %v649_v46 = vsel %vm601_vm2, %v648_v43, -inf }
 0x3f6   : > { %650 = vmax.xlane.f32.xlu1 %v649_v46  ;;  %v1519_v47 = vpop.f32.mrb[3].mxu1 }
 0x3fb   : > { %v755_v48 = vpop.f32.mrb[4].mxu1 }
 0x3fc   : > { %v761_v49 = vsel %vm2260_vm3, %v755_v48, -1e+09  ;;  %v1530_v50 = vpop.f32.mrb[5].mxu1 }
 0x3fd   : > { %v758_v51 = vpop.f32.mrb[6].mxu1  ;;  %v762_v52 = vsel %vm601_vm2, %v761_v49, -inf }
 0x3fe   : > { %763 = vmax.xlane.f32.xlu0 %v762_v52  ;;  %v1531_v53 = vpop.f32.mrb[7].mxu1 }
 0x403   : > { %v872_v54 = vpop.f32.mrb[8].mxu1 }
 0x404   : > { %v878_v55 = vsel %vm2260_vm3, %v872_v54, -1e+09  ;;  %v1542_v56 = vpop.f32.mrb[9].mxu1 }
 0x405   : > { %v875_v57 = vpop.f32.mrb[10].mxu1  ;;  %v879_v58 = vsel %vm601_vm2, %v878_v55, -inf  ;;  %v1689_v56 = vld [vmem:[%s2402_s6] sm:$0xff]  }
 0x406   : > { %880 = vmax.xlane.f32.xlu1 %v879_v58  ;;  %v1543_v59 = vpop.f32.mrb[11].mxu1  ;;  %1563 = vmatpush3.bf16.msra.mxu1 %v1689_v56  ;;  %v1690_v57 = vld [vmem:[%s2402_s6 + $0x8] sm:$0xff]  }
 0x407   : > { %1564 = vmatprep.subr.bf16.mxu1 %v1922_v8 }
 0x40a   : > { %1565 = vmatpush3.bf16.msra.mxu1 %v1690_v57 }
 0x40b   : > { %v989_v60 = vpop.f32.mrb[12].mxu1  ;;  %1578 = vmatprep.subr.bf16.mxu1 %v1922_v8 }
 0x40c   : > { %v995_v61 = vsel %vm2260_vm3, %v989_v60, -1e+09  ;;  %v1554_v62 = vpop.f32.mrb[13].mxu1 }
 0x40d   : > { %v992_v63 = vpop.f32.mrb[14].mxu1  ;;  %v996_v1 = vsel %vm601_vm2, %v995_v61, -inf }
 0x40e   : > { %997 = vmax.xlane.f32.xlu0 %v996_v1  ;;  %v1555_v2 = vpop.f32.mrb[15].mxu1 }
 0x483   : > { %v651_v3 = vpop.xlane.xlu1 %650 }
 0x484   : > { %v652_v4 = vsub.f32 %v648_v43, %v651_v3 }
 0x486   : > { %v653_v5 = vmul.f32 1.442695, %v652_v4 }
 0x488   : > { %1699 = vpow2.f32 %v653_v5 }
 0x48b   : > { %v764_v6 = vpop.xlane.xlu0 %763 }
 0x48c   : > { %v765_v7 = vsub.f32 %v761_v49, %v764_v6 }
 0x48e   : > { %v766_v9 = vmul.f32 1.442695, %v765_v7 }
 0x490   : > { %1701 = vpow2.f32 %v766_v9  ;;  %v1456_v9 = vld [vmem:[#allocation8] ss:$0 sm:$0xff] }
 0x492   : > { %v1700_v10 = vpop.eup %1699 }
 0x493   : > { %v655_v11 = vsel %vm601_vm2, %v1700_v10, 0.0  ;;  %v881_v19 = vpop.xlane.xlu1 %880 }
 0x494   : > { %656 = vadd.xlane.f32.xlu1 %v655_v11  ;;  %v882_v20 = vsub.f32 %v878_v55, %v881_v19 }
 0x496   : > { %v883_v21 = vmul.f32 1.442695, %v882_v20 }
 0x49a   : > { %v1702_v12 = vpop.eup %1701 }
 0x49b   : > { %v998_v13 = vpop.xlane.xlu0 %997  ;;  %v768_v14 = vsel %vm601_vm2, %v1702_v12, 0.0 }
 0x49c   : > { %v999_v15 = vsub.f32 %v995_v61, %v998_v13  ;;  %769 = vadd.xlane.f32.xlu0 %v768_v14 }
 0x49e   : > { %v1000_v16 = vmul.f32 1.442695, %v999_v15 }
 0x4a0   : > { %1703 = vpow2.f32 %v1000_v16 }
 0x4a1   : > { %1705 = vpow2.f32 %v883_v21 }
 0x4a5   : > { %661 = vrot.lane.b32.xlu1 %v2229_v25, %s1931_s25 }
 0x4aa   : > { %v1704_v17 = vpop.eup %1703 }
 0x4ab   : > { %v1002_v18 = vsel %vm601_vm2, %v1704_v17, 0.0  ;;  %v1706_v22 = vpop.eup %1705 }
 0x4ac   : > { %1003 = vadd.xlane.f32.xlu0 %v1002_v18  ;;  %v885_v23 = vsel %vm601_vm2, %v1706_v22, 0.0 }
 0x4c2   : > { %774 = vrot.lane.b32.xlu0 %v2229_v25, %s1932_s28 }
 0x4c9   : > { %886 = vadd.xlane.f32.xlu1 %v885_v23  ;;  %v1693_v23 = vld [vmem:[%s2408_s12] sm:$0xff]  }
 0x4da   : > { %891 = vrot.lane.b32.xlu1 %v2229_v25, %s1933_s20 }
 0x4de   : > { %1008 = vrot.lane.b32.xlu1 %v2229_v25, %s1934_s22 }
 0x521   : > { %v657_v24 = vpop.xlane.xlu1 %656 }
 0x522   : > { %1707 = vrcp.f32 %v657_v24  ;;  %v1694_v24 = vld [vmem:[%s2408_s12 + $0x8] sm:$0xff]  }
 0x525   : > { %v662_v26 = vpop.permute.xlu1 %661 }
 0x526   : > { %v668_v27 = vsel %vm666_vm4, %v662_v26, 0 }
 0x527   : > { %1521 = vmatpush3.bf16.msra.mxu0 %v668_v27 }
 0x528   : > { %1532 = vmatprep.subr.bf16.mxu0 %v1922_v8 }
 0x529   : > { %v770_v29 = vpop.xlane.xlu0 %769 }
 0x52a   : > { %1709 = vrcp.f32 %v770_v29 }
 0x52c   : > { %v1708_v28 = vpop.eup %1707 }
 0x52d   : > { %v659_v30 = vmul.f32 %v1708_v28, %v1700_v10 }
 0x52f   : > { %v660_v31 = vpack.c.bf16 %v659_v30, %v659_v30  ;;  %v1460_v30 = vld [vmem:[#allocation10] ss:$0 sm:$0xff] }
 0x531   : > { %1523 = vmatmul.mubr.msk.bf16.vlgmr.msra.gmra.mrb[4].mxu0 %vm601_vm2, %v660_v31 }
 0x532   : > { %1534 = vmatprep.mubr.msk.bf16.mxu0 %vm1923_vm1, %v1922_v8 }
 0x534   : > { %v1710_v25 = vpop.eup %1709 }
 0x535   : > { %v772_v33 = vmul.f32 %v1710_v25, %v1702_v12  ;;  %v1461_v25 = vld [vmem:[#allocation11] ss:$0 sm:$0xff] }
 0x537   : > { %v773_v36 = vpack.c.bf16 %v772_v33, %v772_v33 }
 0x539   : > { %v1004_v32 = vpop.xlane.xlu0 %1003 }
 0x53d   : > { %v775_v34 = vpop.permute.xlu0 %774 }
 0x53e   : > { %v780_v35 = vsel %vm666_vm4, %v775_v34, 0 }
 0x53f   : > { %1533 = vmatpush3.bf16.msra.mxu0 %v780_v35  ;;  %v1695_v35 = vld [vmem:[%s2408_s12 + $0x10] sm:$0xff]  }
 0x540   : > { %1544 = vmatprep.subr.bf16.mxu0 %v1922_v8 }
 0x542   : > { %1535 = vmatmul.mubr.msk.bf16.vlgmr.msra.gmra.mrb[8].mxu0 %vm601_vm2, %v773_v36  ;;  %v1696_v36 = vld [vmem:[%s2408_s12 + $0x18] sm:$0xff]  }
 0x543   : > { %1546 = vmatprep.mubr.msk.bf16.mxu0 %vm1923_vm1, %v1922_v8 }
 0x556   : > { %v887_v37 = vpop.xlane.xlu1 %886 }
 0x557   : > { %1711 = vrcp.f32 %v887_v37  ;;  %v1462_v37 = vld [vmem:[%s2407_s11] ss:$0 sm:$0xff] }
 0x558   : > { %1713 = vrcp.f32 %v1004_v32 }
 0x55a   : > { %v892_v38 = vpop.permute.xlu1 %891 }
 0x55b   : > { %v897_v39 = vsel %vm666_vm4, %v892_v38, 0 }
 0x55c   : > { %1545 = vmatpush3.bf16.msra.mxu0 %v897_v39 }
 0x55d   : > { %1556 = vmatprep.subr.bf16.mxu0 %v1922_v8 }
 0x55e   : > { %v1009_v42 = vpop.permute.xlu1 %1008 }
 0x55f   : > { %v1014_v45 = vsel %vm666_vm4, %v1009_v42, 0 }
 0x561   : > { %v1712_v40 = vpop.eup %1711 }
 0x562   : > { %v889_v41 = vmul.f32 %v1712_v40, %v1706_v22  ;;  %v1714_v44 = vpop.eup %1713  ;;  %v1691_v22 = vld [vmem:[%s2406_s10] sm:$0xff]  }
 0x563   : > { %v1006_v46 = vmul.f32 %v1714_v44, %v1704_v17 }
 0x564   : > { %v890_v43 = vpack.c.bf16 %v889_v41, %v889_v41 }
 0x565   : > { %v1007_v47 = vpack.c.bf16 %v1006_v46, %v1006_v46 }
 0x566   : > { %1547 = vmatmul.mubr.msk.bf16.vlgmr.msra.gmra.mrb[12].mxu0 %vm601_vm2, %v890_v43 }
 0x567   : > { %1557 = vmatpush3.bf16.msra.mxu0 %v1014_v45  ;;  %1558 = vmatprep.mubr.msk.bf16.mxu0 %vm1923_vm1, %v1922_v8 }
 0x568   : > { %1570 = vmatprep.subr.bf16.mxu0 %v1922_v8 }
 0x56e   : > { %1559 = vmatmul.mubr.msk.bf16.vlgmr.msra.gmra.mrb[16].mxu0 %vm601_vm2, %v1007_v47 }
 0x56f   : > { %1574 = vmatprep.mubr.msk.bf16.mxu0 %vm1923_vm1, %v1922_v8  ;;  %1571 = vmatpush3.bf16.msra.mxu0 %v1691_v22 }
 0x570   : > { %1572 = vmatprep.subr.bf16.mxu0 %v1922_v8 }
 0x604   : > { %v704_v48 = vpop.f32.mrb[4].mxu0 }
 0x605   : > { %710 = vst.msk [vmem:[#allocation2] sm:$0xff] %vm601_vm2, %v704_v48  ;;  %v1524_v49 = vpop.f32.mrb[5].mxu0 }
 0x606   : > { %v707_v50 = vpop.f32.mrb[6].mxu0 }
 0x607   : > { %v1525_v51 = vpop.f32.mrb[7].mxu0 }
 0x615   : > { %v816_v52 = vpop.f32.mrb[8].mxu0 }
 0x616   : > { %823 = vrot.lane.b32.xlu0 %v816_v52, %s1935_s14  ;;  %v1536_v53 = vpop.f32.mrb[9].mxu0  ;;  %s2442_s14 = sld [smem:[#allocation25_spill]] }
 0x617   : > { %v819_v54 = vpop.f32.mrb[10].mxu0 }
 0x618   : > { %v1537_v55 = vpop.f32.mrb[11].mxu0 }
 0x61c   : > { %s2353_s30 = scalar_lea.hbm %s2442_s14, %s1473_s29 }
 0x639   : > { %v933_v58 = vpop.f32.mrb[12].mxu0 }
 0x63a   : > { %940 = vrot.lane.b32.xlu1 %v933_v58, %s1936_s18  ;;  %v1548_v59 = vpop.f32.mrb[13].mxu0  ;;  %s1845_s18 = scalar_lea.vmem %s1844_s17, 256 }
 0x63b   : > { %v936_v60 = vpop.f32.mrb[14].mxu0 }
 0x63c   : > { %v1549_v61 = vpop.f32.mrb[15].mxu0 }
 0x641   : > { %v1050_v62 = vpop.f32.mrb[16].mxu0 }
 0x642   : > { %1057 = vrot.lane.b32.xlu0 %v1050_v62, %s1937_s27  ;;  %v1560_v63 = vpop.f32.mrb[17].mxu0  ;;  %s485_s27 = sand.u32 1, %s1907_s24  }
 0x643   : > { %v1053_v1 = vpop.f32.mrb[18].mxu0  ;;  %s1440_s21 = sshll.u32 %s485_s27, 3  ;;  %s1315_s0 = scalar_lea.sflag [#allocation7], %s485_s27 }
 0x644   : > { %v1561_v2 = vpop.f32.mrb[19].mxu0  ;;  %s487_s25 = scalar_lea.vmem [#allocation13], %s1440_s21 }
 0x645   : > { %s1328_s28 = sshll.u32 %s487_s25, 4  ;;  %s2355_s28 = int_to_ptr.vmem [resolvable:$true] %s1328_s28 }
 0x646   : > { %s1839_s26 = scalar_lea.vmem %s2355_s28, 128  ;;  %p1846_p11 = scmp.lt.s32.totalorder %s2355_s28, %s1844_s17 }
 0x647   : > { %p1840_p5 = scmp.ne.s32.totalorder %s2355_s28, %s1839_s26  ;;  %p1847_p0 = scmp.lt.s32.totalorder %s1845_s18, %s1839_s26 }
 0x649   : > { %p1841_p7 = pnand %p1840_p5, %p2443_p6  ;;  %p1848_p2 = por %p1847_p0, %p1846_p11 }
 0x64b   : > { %p1842_p10 = pneg %p1841_p7 }
 0x64d   : > { %p1849_p4 = pnand %p1848_p2, %p1842_p10 }
 0x688   : > { %v824_v3 = vpop.permute.xlu0 %823 }
 0x689   : > { %827 = vst.msk [vmem:[#allocation2] sm:$0xff] %vm826_vm5, %v824_v3 }
 0x6ac   : > { %v941_v4 = vpop.permute.xlu1 %940 }
 0x6ad   : > { %944 = vst.msk [vmem:[#allocation2] sm:$0xff] %vm943_vm6, %v941_v4 }
 0x6b4   : > { %v1058_v5 = vpop.permute.xlu0 %1057 }
 0x6b5   : > { %1061 = vst.msk [vmem:[#allocation2] sm:$0xff] %vm1060_vm7, %v1058_v5 }
 0x6bc   : > { %v1062_v6 = vld [vmem:[#allocation2] sm:$0xff] }
 0x6bd   : > { %v1063_v7 = vpack.c.bf16 %v1062_v6, %v1062_v6 }
 0x6bf   : > { %1567 = vmatmul.mubr.msk.bf16.vlgmr.msra.gmra.mrb[16].mxu1 %vm494_vm0, %v1063_v7 }
 0x6c0   : > { %1586 = vmatprep.mubr.msk.bf16.mxu1 %vm1923_vm1, %v1922_v8  ;;  %1579 = vmatpush3.bf16.msra.mxu1 %v1693_v23 }
 0x6c1   : > { %1580 = vmatprep.subr.bf16.mxu1 %v1922_v8 }
 0x6c4   : > { %1581 = vmatpush3.bf16.msra.mxu1 %v1694_v24 }
 0x6c5   : > { %1582 = vmatprep.subr.bf16.mxu1 %v1922_v8 }
 0x6c8   : > { %1583 = vmatpush3.bf16.msra.mxu1 %v1695_v35 }
 0x6c9   : > { %1584 = vmatprep.subr.bf16.mxu1 %v1922_v8  ;;  %v1466_v8 = vld [vmem:[%s2409_s13] ss:$0 sm:$0xff] }
 0x6cc   : > { %1585 = vmatpush3.bf16.msra.mxu1 %v1696_v36 }
 0x792   : > { %v1124_v10 = vpop.f32.mrb[16].mxu1 }
 0x793   : > { %v1125_v11 = vadd.f32 %v1456_v9, %v1124_v10  ;;  %v1568_v12 = vpop.f32.mrb[17].mxu1 }
 0x794   : > { %v1127_v13 = vpop.f32.mrb[18].mxu1 }
 0x795   : > { %v1130_v14 = vadd.f32 %v1125_v11, %v2200_v0  ;;  %v1569_v15 = vpop.f32.mrb[19].mxu1  ;;  %v1692_v0 = vld [vmem:[%s2406_s10 + $0x8] sm:$0xff]  }
 0x796   : > { %1573 = vmatpush3.bf16.msra.mxu0 %v1692_v0 }
 0x797   : > { %v1131_v16 = vsel %vm494_vm0, %v1130_v14, 0.0 }
 0x798   : > { %1132 = vadd.xlane.f32.xlu1 %v1131_v16 }
 0x825   : > { %v1133_v17 = vpop.xlane.xlu1 %1132 }
 0x826   : > { %v1134_v18 = vmul.f32 0.03125, %v1133_v17 }
 0x828   : > { %v1135_v19 = vsub.f32 %v1130_v14, %v1134_v18 }
 0x82a   : > { %v1136_v20 = vmul.f32 %v1135_v19, %v1135_v19 }
 0x82c   : > { %v1137_v21 = vsel %vm494_vm0, %v1136_v20, 0.0 }
 0x82d   : > { %1138 = vadd.xlane.f32.xlu0 %v1137_v21 }
 0x8ba   : > { %v1139_v26 = vpop.xlane.xlu0 %1138 }
 0x8bb   : > { %v1140_v27 = vmul.f32 0.03125, %v1139_v26 }
 0x8bd   : > { %v1141_v28 = vadd.f32 1e-05, %v1140_v27 }
 0x8bf   : > { %1715 = vrsqrt.f32 %v1141_v28 }
 0x8c9   : > { %v1716_v29 = vpop.eup %1715 }
 0x8ca   : > { %v1143_v31 = vmul.f32 %v1716_v29, %v1135_v19 }
 0x8cc   : > { %v1151_v32 = vmul.f32 %v1460_v30, %v1143_v31 }
 0x8ce   : > { %v1159_v33 = vadd.f32 %v1461_v25, %v1151_v32 }
 0x8d0   : > { %v1160_v34 = vpack.c.bf16 %v1159_v33, %v1159_v33 }
 0x8d2   : > { %1575 = vmatmul.mubr.msk.bf16.vlgmr.msra.gmra.mrb[20].mxu0 %vm494_vm0, %v1160_v34 }
 0x9a5   : > { %v1221_v38 = vpop.f32.mrb[20].mxu0 }
 0x9a6   : > { %v1222_v39 = vadd.f32 %v1462_v37, %v1221_v38  ;;  %v1576_v40 = vpop.f32.mrb[21].mxu0 }
 0x9a7   : > { %v1224_v41 = vpop.f32.mrb[22].mxu0 }
 0x9a8   : > { %v1227_v42 = vmax.f32 %v1222_v39, 0.0  ;;  %v1577_v43 = vpop.f32.mrb[23].mxu0 }
 0x9aa   : > { %v1228_v44 = vpack.c.bf16 %v1227_v42, %v1227_v42 }
 0x9ac   : > { %1587 = vmatmul.mubr.msk.bf16.vlgmr.msra.gmra.mrb[20].mxu1 %vm1268_vm8, %v1228_v44 }
 0xa7f   : > { %v1306_v45 = vpop.f32.mrb[20].mxu1 }
 0xa80   : > { %v1307_v46 = vadd.f32 %v1466_v8, %v1306_v45  ;;  %v1588_v47 = vpop.f32.mrb[21].mxu1 }
 0xa81   : > { %v1309_v48 = vpop.f32.mrb[22].mxu1 }
 0xa82   : > { %v1312_v49 = vadd.f32 %v1307_v46, %v1130_v14  ;;  %v1589_v50 = vpop.f32.mrb[23].mxu1 }
 0xa84   : > { %1313 = vst.msk [vmem:[%s487_s25] sm:$0xff] %vm494_vm0, %v1312_v49 }
 0xa85   : > { %1852 = shalt.err (!%p1849_p4)
}
 0xa86   : > { %s1853_s27 = scalar_lea.hbm %s2353_s30, 128  ;;  %s1857_s19 = scalar_lea.hbm %s2442_s14, 256 }
 0xa87   : > { %p1854_p3 = scmp.ne.s32.totalorder %s2353_s30, %s1853_s27  ;;  %p1858_p12 = scmp.lt.u32.totalorder %s2353_s30, %s2442_s14 }
 0xa88   : > { %p1859_p1 = scmp.lt.u32.totalorder %s1857_s19, %s1853_s27  ;;  %p1861_p5 = scmp.lt.u32.totalorder %s1853_s27, %s2353_s30 }
 0xa89   : > { %p1855_p9 = pnand %p1854_p3, %p2443_p6 }
 0xa8a   : > { %p1860_p13 = por %p1859_p1, %p1858_p12 }
 0xa8b   : > { %p1856_p8 = pneg %p1855_p9 }
 0xa8c   : > { %p1862_p7 = por %p1861_p5, %p1860_p13 }
 0xa8e   : > { %p1863_p10 = pnand %p1862_p7, %p1856_p8 }
 0xa90   : > { %1866 = shalt.err (!%p1863_p10)
}
 0xa91   : > { %1606 = dma.vmem_to_hbm [thread:$0]  (%p2443_p6), %s2355_s28, 128, %s2353_s30, %s1315_s0  }
 0xa92 PF: > { %s2444_s20 = sld [smem:[#allocation21_spill]]  ;;  %s2445_s22 = sld [smem:[#allocation19_spill]] }
 0xa93   : > { %s2446_s26 = sld [smem:[#allocation24_spill]] }
 0xa98   : > { %p1633_p11 = scmp.ge.s32.totalorder %s2444_s20, 2  ;;  %s1340_s15 = sand.u32 1, %s2445_s22  }
 0xa99   : > { %p2447_p0 = scmp.ne.s32.totalorder %s2446_s26, 0  ;;  %s1341_s17 = scalar_lea.sflag [#allocation7], %s1340_s15 }
 0xa9b   : > { %p1622_p2 = pnand %p1633_p11, %p2447_p0 }
 0xa9d   : > { %1898 = dma.done.wait (!%p1622_p2), %s1341_s17, 128  }
 0xa9e   : > { %1900 = vsyncadd (!%p1622_p2), %s1341_s17, 4294967168  ;;  %s2448_s26 = sld [smem:[#allocation22_spill]]  ;;  %s2449_s18 = sld [smem:[#allocation20_spill]] }
 0xa9f   : > { %s2450_s25 = sld [smem:[#allocation23_spill]]  ;;  %s2451_s23 = smov %s1907_s24 }
 0xaa4   : > { %p31_p4 = scmp.ge.s32.totalorder %s2448_s26, 4   ;;  %s2452_s24 = smov %s2449_s18 }
 0xaa6   :  { %33 = sbr.rel (!%p31_p4) target bundleno = 18 (0x12), region = 124 }
 0xaad   :  { %1346 = vsyncpa [#allocation6], 1 }
 0xaae   :  { %1348 = vsyncpa [#allocation6 + $0x1], 1 }
 0xaaf   :  { %1349 = vsyncpa [#allocation9], 1 }
 0xab0   :  { %1350 = vsyncpa [#allocation12], 1 }
 0xab1   :  { %1351 = vsyncpa [#allocation7], 1 }
 0xab2   :  { %1353 = vsyncpa [#allocation7 + $0x1], 1 }

</bundles_post_ra>
